<compile_context>
chip_gen: v7x
topology: tpu7x:2x2x1
jax: 0.10.0
libtpu: 0.0.40
codegen_flags: <defaults>
</compile_context>

<pallas_src>
import jax
import jax.numpy as jnp
from jax import lax
from jax.experimental import pallas as pl
from jax.experimental.pallas import tpu as pltpu

# ---- Config (mirrors the fields DynamicEncoder reads from `config`) ----
N_FEATURES_DYNAMIC = 4    # config.n_features_dynamic  -> LSTM input_size
HIDDEN_SIZE = 32          # config.dynamic_encoder.hidden_size
RNN_LAYERS = 1            # config.dynamic_encoder.rnn_layers
DROPOUT_P = 0.1           # config.dynamic_encoder.dropout_p (eval -> identity)
RNN_TYPE = "lstm"         # config.dynamic_encoder.rnn_type
N_BASIS = 8               # config.n_basis (dynamic_bias disabled -> latent = n_basis)
TIME_STEPS = 8
BATCH = 2
BN_EPS = 1e-5             # torch.nn.BatchNorm1d default eps

B_PAD = 8                 # batch padded to one f32 sublane group
F_PAD = 8                 # features + ones(bias) column, padded to a sublane group


def _encoder_kernel(x_ref, p_ref, out_ref):
    """x_ref: (T*8, F_PAD) time-major; column F holds ones (bias rides in wx).
    p_ref: parameter slab (8 + 128 + 128 + 8, 128) = [wx | wh | wfc | bfc].
    out_ref: (8, 128); rows [0,B) x lanes [0,L) are the real output."""
    TB, FA = x_ref.shape
    H4 = p_ref.shape[-1]          # 128 (= 4 * hidden)
    H = H4 // 4
    B8 = out_ref.shape[0]         # 8
    T = TB // B8

    # Static, sublane-aligned row slices of the single resident param slab.
    wx = p_ref[0:FA, :]                             # (8, 128)   row F = fused bias
    wh = p_ref[FA:FA + H4, :]                       # (128, 128) rows >= H are zero
    wfc = p_ref[FA + H4:FA + 2 * H4, :]             # (128, 128) BN folded, rows >= H zero
    bfc = p_ref[FA + 2 * H4:FA + 2 * H4 + B8, :]    # (8, 128)   BN folded, row-replicated

    # Input projection (+ bias) for ALL time steps in one lane-dense matmul.
    xw_all = jnp.dot(x_ref[...], wx, preferred_element_type=jnp.float32)   # (T*8, 128)

    # Single-tanh activation: sigmoid(z) = 0.5 + 0.5*tanh(z/2).  The /2 is
    # already folded into the i/f/o columns of wx/wh, so
    # act = a_lane * tanh(pre) + b_lane yields [i, f, g, o] in one EUP pass.
    lane = lax.broadcasted_iota(jnp.int32, (B8, H4), 1)
    is_g = (lane >= 2 * H) & (lane < 3 * H)
    a_lane = jnp.where(is_g, 1.0, 0.5)
    b_lane = jnp.where(is_g, 0.0, 0.5)

    # Recurrent state kept full-lane-width; only lanes [0, H) are meaningful.
    h_full = jnp.zeros((B8, H4), jnp.float32)
    c_full = jnp.zeros((B8, H4), jnp.float32)

    # T is static and tiny -> fully unrolled straight-line recurrence.
    for t in range(T):
        pre = xw_all[t * B8:(t + 1) * B8, :] + jnp.dot(
            h_full, wh, preferred_element_type=jnp.float32)      # (8, 128)
        act = a_lane * jnp.tanh(pre) + b_lane                    # lanes: [i|f|g|o]
        # XLU lane-rolls align f / g / o under the i lanes so all gate math
        # runs full-width (no sub-vreg slices on the serial path).  Junk in
        # lanes >= H is bounded and killed by the zero rows of wh / wfc.
        f_al = pltpu.roll(act, shift=3 * H, axis=1)   # f at lanes [0,H)
        g_al = pltpu.roll(act, shift=2 * H, axis=1)   # g at lanes [0,H)
        o_al = pltpu.roll(act, shift=H, axis=1)       # o at lanes [0,H)
        c_full = f_al * c_full + act * g_al           # lanes [0,H): f*c + i*g
        h_full = o_al * jnp.tanh(c_full)              # lanes [0,H): o*tanh(c)

    # fc (eval-BatchNorm folded in) + ReLU.  Dropout = identity in eval mode.
    y = jnp.dot(h_full, wfc, preferred_element_type=jnp.float32) + bfc
    out_ref[...] = jnp.maximum(y, 0.0).astype(out_ref.dtype)


def pack_params(params):
    """Fold eval-mode BatchNorm into fc, fold the sigmoid-as-tanh 0.5 pre-scale
    into the i/f/o gate columns, and pack every constant into one lane-dense
    (272, 128) slab -> a single HBM->VMEM DMA."""
    F, H4 = params["wx"].shape
    H = H4 // 4
    L = params["wfc"].shape[1]

    lane = jnp.arange(H4)
    col_scale = jnp.where((lane >= 2 * H) & (lane < 3 * H), 1.0, 0.5)   # (4H,)

    wx_s = params["wx"] * col_scale                 # (F, 4H)
    b_s = params["b"] * col_scale                   # (1, 4H)
    wh_s = params["wh"] * col_scale                 # (H, 4H)

    wx_blk = jnp.zeros((F_PAD, H4), jnp.float32)
    wx_blk = wx_blk.at[:F, :].set(wx_s).at[F, :].set(b_s[0])            # (8, 128)

    wh_blk = jnp.zeros((H4, H4), jnp.float32).at[:H, :].set(wh_s)       # (128, 128)

    # Eval-mode BatchNorm (running stats) folded into the FC layer.
    scale = params["gamma"] * lax.rsqrt(params["var"] + BN_EPS)         # (1, L)
    wfc = params["wfc"] * scale                                         # (H, L)
    bfc = (params["bfc"] - params["mean"]) * scale + params["beta"]     # (1, L)

    wfc_blk = jnp.zeros((H4, H4), jnp.float32).at[:H, :L].set(wfc)      # (128, 128)
    bfc_blk = jnp.zeros((B_PAD, H4), jnp.float32).at[:, :L].set(
        jnp.broadcast_to(bfc, (B_PAD, L)))                              # (8, 128)

    return jnp.concatenate([wx_blk, wh_blk, wfc_blk, bfc_blk], axis=0)  # (272, 128)


def dynamic_encoder_forward(x, params):
    """x: (B, n_dynamic_features, time_steps) — matches DynamicEncoder.forward
    which permutes to (B, T, F) before the batch_first LSTM (eval mode)."""
    B, F, T = x.shape
    L = params["wfc"].shape[1]
    assert B <= B_PAD and F + 1 <= F_PAD

    # Single relayout: (B, F, T) -> (T, B, F); pad batch to one 8-row sublane
    # group; append a ones column (bias rides in wx); zero-pad features to 8.
    xt = jnp.transpose(x, (2, 0, 1)).astype(jnp.float32)                 # (T, B, F)
    xt = jnp.pad(xt, ((0, 0), (0, B_PAD - B), (0, 0)))                   # (T, 8, F)
    ones = jnp.ones((T, B_PAD, 1), jnp.float32)
    x_aug = jnp.concatenate([xt, ones], axis=-1)                         # (T, 8, F+1)
    x_aug = jnp.pad(x_aug, ((0, 0), (0, 0), (0, F_PAD - F - 1)))         # (T, 8, 8)
    x_flat = x_aug.reshape(T * B_PAD, F_PAD)

    slab = pack_params(params)

    vmem = pl.BlockSpec(memory_space=pltpu.MemorySpace.VMEM)
    out = pl.pallas_call(
        _encoder_kernel,
        out_shape=jax.ShapeDtypeStruct((B_PAD, 4 * HIDDEN_SIZE), jnp.float32),
        in_specs=[vmem, vmem],
        out_specs=vmem,
    )(x_flat, slab)
    return out[:B, :L]


def init_params(key):
    """Deterministic parameter init matching the PyTorch module's shapes,
    pre-packed into fused 'activation @ weight' form."""
    F, H, L = N_FEATURES_DYNAMIC, HIDDEN_SIZE, N_BASIS
    ks = jax.random.split(key, 10)
    s = float(H) ** -0.5

    def u(k, shape, lo=-s, hi=s):
        return jax.random.uniform(k, shape, jnp.float32, lo, hi)

    # PyTorch LSTM params: weight_ih_l0 (4H, F), weight_hh_l0 (4H, H), biases (4H,)
    # Gate order along the 4H axis is (i, f, g, o).  Fuse along the output dim.
    w_ih = u(ks[0], (4 * H, F))
    w_hh = u(ks[1], (4 * H, H))
    b_ih = u(ks[2], (4 * H,))
    b_hh = u(ks[3], (4 * H,))
    wx = jnp.transpose(w_ih)                    # (F, 4H)  lane-dense: 4H = 128
    wh = jnp.transpose(w_hh)                    # (H, 4H)
    b = (b_ih + b_hh).reshape(1, 4 * H)         # (1, 4H)

    # fc: Linear(H, L)
    w_fc = u(ks[4], (L, H))
    b_fc = u(ks[5], (L,))

    # BatchNorm1d(L): gamma, beta, running_mean, running_var
    gamma = jax.random.uniform(ks[6], (L,), jnp.float32, 0.5, 1.5)
    beta = jax.random.uniform(ks[7], (L,), jnp.float32, -0.5, 0.5)
    mean = jax.random.uniform(ks[8], (L,), jnp.float32, -0.5, 0.5)
    var = jax.random.uniform(ks[9], (L,), jnp.float32, 0.5, 1.5)

    return {
        "wx": wx, "wh": wh, "b": b,
        "wfc": jnp.transpose(w_fc), "bfc": b_fc.reshape(1, L),
        "gamma": gamma.reshape(1, L), "beta": beta.reshape(1, L),
        "mean": mean.reshape(1, L), "var": var.reshape(1, L),
    }


def reference_forward(x, params):
    """Pure-JAX reference of the PyTorch forward (eval mode) with standard
    sigmoid gates and explicit (un-folded) BatchNorm, to validate the kernel's
    tanh-only activation, BN folding, batch padding and lane rolls."""
    xp = jnp.transpose(x, (0, 2, 1)).astype(jnp.float32)   # (B, T, F)
    B = xp.shape[0]
    H = HIDDEN_SIZE
    wx, wh, b = params["wx"], params["wh"], params["b"]

    def step(carry, xt):
        h, c = carry
        pre = xt @ wx + h @ wh + b                  # (B, 4H), gate order i,f,g,o
        i = jax.nn.sigmoid(pre[:, 0:H])
        f = jax.nn.sigmoid(pre[:, H:2 * H])
        g = jnp.tanh(pre[:, 2 * H:3 * H])
        o = jax.nn.sigmoid(pre[:, 3 * H:4 * H])
        c = f * c + i * g
        h = o * jnp.tanh(c)
        return (h, c), None

    h0 = jnp.zeros((B, H), jnp.float32)
    (h, _), _ = lax.scan(step, (h0, h0), jnp.transpose(xp, (1, 0, 2)))
    y = h @ params["wfc"] + params["bfc"]
    y = (y - params["mean"]) * lax.rsqrt(params["var"] + BN_EPS) * params["gamma"] + params["beta"]
    return jnp.maximum(y, 0.0)


if __name__ == "__main__":
    key = jax.random.PRNGKey(0)
    k_params, k_x = jax.random.split(key)

    params = init_params(k_params)
    # x: (batch, n_dynamic_features, time_steps) — see layout comment above.
    x = jax.random.normal(k_x, (BATCH, N_FEATURES_DYNAMIC, TIME_STEPS), jnp.float32)

    out = jax.block_until_ready(dynamic_encoder_forward(x, params))
    ref = jax.block_until_ready(reference_forward(x, params))

    assert out.shape == (BATCH, N_BASIS)
    # Relaxed tolerance: BN fold + sigmoid-as-tanh change the f32 rounding
    # order of a handful of ops.
    assert jnp.allclose(out, ref, atol=1e-4, rtol=1e-4), (out, ref)

    print("KERNEL_OK")
</pallas_src>

<mosaic_0001>
module attributes {stable_mosaic.version = 11 : i64} {
  func.func @_encoder_kernel(%arg0: memref<64x8xf32, #tpu.memory_space<vmem>>, %arg1: memref<272x128xf32, #tpu.memory_space<vmem>>, %arg2: memref<8x128xf32, #tpu.memory_space<vmem>>) attributes {dimension_semantics = [], scalar_prefetch = 0 : i64, scratch_operands = 0 : i64, tpu.core_type = #tpu.core_type<tc>} {
    %c0 = arith.constant 0 : index
    %c0_0 = arith.constant 0 : index
    %0 = vector.load %arg1[%c0, %c0_0] : memref<272x128xf32, #tpu.memory_space<vmem>>, vector<8x128xf32>
    %c8 = arith.constant 8 : index
    %c0_1 = arith.constant 0 : index
    %1 = vector.load %arg1[%c8, %c0_1] : memref<272x128xf32, #tpu.memory_space<vmem>>, vector<128x128xf32>
    %c136 = arith.constant 136 : index
    %c0_2 = arith.constant 0 : index
    %2 = vector.load %arg1[%c136, %c0_2] : memref<272x128xf32, #tpu.memory_space<vmem>>, vector<128x128xf32>
    %c264 = arith.constant 264 : index
    %c0_3 = arith.constant 0 : index
    %3 = vector.load %arg1[%c264, %c0_3] : memref<272x128xf32, #tpu.memory_space<vmem>>, vector<8x128xf32>
    %c0_4 = arith.constant 0 : index
    %c0_5 = arith.constant 0 : index
    %4 = vector.load %arg0[%c0_4, %c0_5] : memref<64x8xf32, #tpu.memory_space<vmem>>, vector<64x8xf32>
    %cst = arith.constant dense<0.000000e+00> : vector<64x128xf32>
    %5 = tpu.matmul %4, %0, %cst {dimension_numbers = #tpu.dot_dimension_numbers<[1], [0], [0], [1], [0, 0, 1, 1], [], []>} : vector<64x8xf32>, vector<8x128xf32>, vector<64x128xf32> -> vector<64x128xf32>
    %6 = tpu.iota {dimensions = array<i32: 1>} : vector<8x128xi32>
    %c64_i32 = arith.constant 64 : i32
    %7 = vector.broadcast %c64_i32 : i32 to vector<8x128xi32>
    %8 = arith.cmpi sge, %6, %7 : vector<8x128xi32>
    %c96_i32 = arith.constant 96 : i32
    %9 = vector.broadcast %c96_i32 : i32 to vector<8x128xi32>
    %10 = arith.cmpi slt, %6, %9 : vector<8x128xi32>
    %11 = arith.andi %8, %10 : vector<8x128xi1>
    %cst_6 = arith.constant 1.000000e+00 : f32
    %cst_7 = arith.constant 5.000000e-01 : f32
    %12 = vector.broadcast %cst_6 : f32 to vector<8x128xf32>
    %13 = vector.broadcast %cst_7 : f32 to vector<8x128xf32>
    %14 = arith.select %11, %12, %13 : vector<8x128xi1>, vector<8x128xf32>
    %cst_8 = arith.constant 0.000000e+00 : f32
    %cst_9 = arith.constant 5.000000e-01 : f32
    %15 = vector.broadcast %cst_8 : f32 to vector<8x128xf32>
    %16 = vector.broadcast %cst_9 : f32 to vector<8x128xf32>
    %17 = arith.select %11, %15, %16 : vector<8x128xi1>, vector<8x128xf32>
    %cst_10 = arith.constant 0.000000e+00 : f32
    %18 = vector.broadcast %cst_10 : f32 to vector<8x128xf32>
    %cst_11 = arith.constant 0.000000e+00 : f32
    %19 = vector.broadcast %cst_11 : f32 to vector<8x128xf32>
    %20 = vector.extract_strided_slice %5 {offsets = [0, 0], sizes = [8, 128], strides = [1, 1]} : vector<64x128xf32> to vector<8x128xf32>
    %cst_12 = arith.constant dense<0.000000e+00> : vector<8x128xf32>
    %21 = tpu.matmul %18, %1, %cst_12 {dimension_numbers = #tpu.dot_dimension_numbers<[1], [0], [0], [1], [0, 0, 1, 1], [], []>} : vector<8x128xf32>, vector<128x128xf32>, vector<8x128xf32> -> vector<8x128xf32>
    %22 = arith.addf %20, %21 : vector<8x128xf32>
    %23 = math.tanh %22 : vector<8x128xf32>
    %24 = arith.mulf %14, %23 : vector<8x128xf32>
    %25 = arith.addf %24, %17 : vector<8x128xf32>
    %c96_i32_13 = arith.constant 96 : i32
    %26 = tpu.dynamic_rotate %25 by %c96_i32_13 dim 1 : vector<8x128xf32>, i32 -> vector<8x128xf32>
    %c64_i32_14 = arith.constant 64 : i32
    %27 = tpu.dynamic_rotate %25 by %c64_i32_14 dim 1 : vector<8x128xf32>, i32 -> vector<8x128xf32>
    %c32_i32 = arith.constant 32 : i32
    %28 = tpu.dynamic_rotate %25 by %c32_i32 dim 1 : vector<8x128xf32>, i32 -> vector<8x128xf32>
    %29 = arith.mulf %26, %19 : vector<8x128xf32>
    %30 = arith.mulf %25, %27 : vector<8x128xf32>
    %31 = arith.addf %29, %30 : vector<8x128xf32>
    %32 = math.tanh %31 : vector<8x128xf32>
    %33 = arith.mulf %28, %32 : vector<8x128xf32>
    %34 = vector.extract_strided_slice %5 {offsets = [8, 0], sizes = [8, 128], strides = [1, 1]} : vector<64x128xf32> to vector<8x128xf32>
    %cst_15 = arith.constant dense<0.000000e+00> : vector<8x128xf32>
    %35 = tpu.matmul %33, %1, %cst_15 {dimension_numbers = #tpu.dot_dimension_numbers<[1], [0], [0], [1], [0, 0, 1, 1], [], []>} : vector<8x128xf32>, vector<128x128xf32>, vector<8x128xf32> -> vector<8x128xf32>
    %36 = arith.addf %34, %35 : vector<8x128xf32>
    %37 = math.tanh %36 : vector<8x128xf32>
    %38 = arith.mulf %14, %37 : vector<8x128xf32>
    %39 = arith.addf %38, %17 : vector<8x128xf32>
    %c96_i32_16 = arith.constant 96 : i32
    %40 = tpu.dynamic_rotate %39 by %c96_i32_16 dim 1 : vector<8x128xf32>, i32 -> vector<8x128xf32>
    %c64_i32_17 = arith.constant 64 : i32
    %41 = tpu.dynamic_rotate %39 by %c64_i32_17 dim 1 : vector<8x128xf32>, i32 -> vector<8x128xf32>
    %c32_i32_18 = arith.constant 32 : i32
    %42 = tpu.dynamic_rotate %39 by %c32_i32_18 dim 1 : vector<8x128xf32>, i32 -> vector<8x128xf32>
    %43 = arith.mulf %40, %31 : vector<8x128xf32>
    %44 = arith.mulf %39, %41 : vector<8x128xf32>
    %45 = arith.addf %43, %44 : vector<8x128xf32>
    %46 = math.tanh %45 : vector<8x128xf32>
    %47 = arith.mulf %42, %46 : vector<8x128xf32>
    %48 = vector.extract_strided_slice %5 {offsets = [16, 0], sizes = [8, 128], strides = [1, 1]} : vector<64x128xf32> to vector<8x128xf32>
    %cst_19 = arith.constant dense<0.000000e+00> : vector<8x128xf32>
    %49 = tpu.matmul %47, %1, %cst_19 {dimension_numbers = #tpu.dot_dimension_numbers<[1], [0], [0], [1], [0, 0, 1, 1], [], []>} : vector<8x128xf32>, vector<128x128xf32>, vector<8x128xf32> -> vector<8x128xf32>
    %50 = arith.addf %48, %49 : vector<8x128xf32>
    %51 = math.tanh %50 : vector<8x128xf32>
    %52 = arith.mulf %14, %51 : vector<8x128xf32>
    %53 = arith.addf %52, %17 : vector<8x128xf32>
    %c96_i32_20 = arith.constant 96 : i32
    %54 = tpu.dynamic_rotate %53 by %c96_i32_20 dim 1 : vector<8x128xf32>, i32 -> vector<8x128xf32>
    %c64_i32_21 = arith.constant 64 : i32
    %55 = tpu.dynamic_rotate %53 by %c64_i32_21 dim 1 : vector<8x128xf32>, i32 -> vector<8x128xf32>
    %c32_i32_22 = arith.constant 32 : i32
    %56 = tpu.dynamic_rotate %53 by %c32_i32_22 dim 1 : vector<8x128xf32>, i32 -> vector<8x128xf32>
    %57 = arith.mulf %54, %45 : vector<8x128xf32>
    %58 = arith.mulf %53, %55 : vector<8x128xf32>
    %59 = arith.addf %57, %58 : vector<8x128xf32>
    %60 = math.tanh %59 : vector<8x128xf32>
    %61 = arith.mulf %56, %60 : vector<8x128xf32>
    %62 = vector.extract_strided_slice %5 {offsets = [24, 0], sizes = [8, 128], strides = [1, 1]} : vector<64x128xf32> to vector<8x128xf32>
    %cst_23 = arith.constant dense<0.000000e+00> : vector<8x128xf32>
    %63 = tpu.matmul %61, %1, %cst_23 {dimension_numbers = #tpu.dot_dimension_numbers<[1], [0], [0], [1], [0, 0, 1, 1], [], []>} : vector<8x128xf32>, vector<128x128xf32>, vector<8x128xf32> -> vector<8x128xf32>
    %64 = arith.addf %62, %63 : vector<8x128xf32>
    %65 = math.tanh %64 : vector<8x128xf32>
    %66 = arith.mulf %14, %65 : vector<8x128xf32>
    %67 = arith.addf %66, %17 : vector<8x128xf32>
    %c96_i32_24 = arith.constant 96 : i32
    %68 = tpu.dynamic_rotate %67 by %c96_i32_24 dim 1 : vector<8x128xf32>, i32 -> vector<8x128xf32>
    %c64_i32_25 = arith.constant 64 : i32
    %69 = tpu.dynamic_rotate %67 by %c64_i32_25 dim 1 : vector<8x128xf32>, i32 -> vector<8x128xf32>
    %c32_i32_26 = arith.constant 32 : i32
    %70 = tpu.dynamic_rotate %67 by %c32_i32_26 dim 1 : vector<8x128xf32>, i32 -> vector<8x128xf32>
    %71 = arith.mulf %68, %59 : vector<8x128xf32>
    %72 = arith.mulf %67, %69 : vector<8x128xf32>
    %73 = arith.addf %71, %72 : vector<8x128xf32>
    %74 = math.tanh %73 : vector<8x128xf32>
    %75 = arith.mulf %70, %74 : vector<8x128xf32>
    %76 = vector.extract_strided_slice %5 {offsets = [32, 0], sizes = [8, 128], strides = [1, 1]} : vector<64x128xf32> to vector<8x128xf32>
    %cst_27 = arith.constant dense<0.000000e+00> : vector<8x128xf32>
    %77 = tpu.matmul %75, %1, %cst_27 {dimension_numbers = #tpu.dot_dimension_numbers<[1], [0], [0], [1], [0, 0, 1, 1], [], []>} : vector<8x128xf32>, vector<128x128xf32>, vector<8x128xf32> -> vector<8x128xf32>
    %78 = arith.addf %76, %77 : vector<8x128xf32>
    %79 = math.tanh %78 : vector<8x128xf32>
    %80 = arith.mulf %14, %79 : vector<8x128xf32>
    %81 = arith.addf %80, %17 : vector<8x128xf32>
    %c96_i32_28 = arith.constant 96 : i32
    %82 = tpu.dynamic_rotate %81 by %c96_i32_28 dim 1 : vector<8x128xf32>, i32 -> vector<8x128xf32>
    %c64_i32_29 = arith.constant 64 : i32
    %83 = tpu.dynamic_rotate %81 by %c64_i32_29 dim 1 : vector<8x128xf32>, i32 -> vector<8x128xf32>
    %c32_i32_30 = arith.constant 32 : i32
    %84 = tpu.dynamic_rotate %81 by %c32_i32_30 dim 1 : vector<8x128xf32>, i32 -> vector<8x128xf32>
    %85 = arith.mulf %82, %73 : vector<8x128xf32>
    %86 = arith.mulf %81, %83 : vector<8x128xf32>
    %87 = arith.addf %85, %86 : vector<8x128xf32>
    %88 = math.tanh %87 : vector<8x128xf32>
    %89 = arith.mulf %84, %88 : vector<8x128xf32>
    %90 = vector.extract_strided_slice %5 {offsets = [40, 0], sizes = [8, 128], strides = [1, 1]} : vector<64x128xf32> to vector<8x128xf32>
    %cst_31 = arith.constant dense<0.000000e+00> : vector<8x128xf32>
    %91 = tpu.matmul %89, %1, %cst_31 {dimension_numbers = #tpu.dot_dimension_numbers<[1], [0], [0], [1], [0, 0, 1, 1], [], []>} : vector<8x128xf32>, vector<128x128xf32>, vector<8x128xf32> -> vector<8x128xf32>
    %92 = arith.addf %90, %91 : vector<8x128xf32>
    %93 = math.tanh %92 : vector<8x128xf32>
    %94 = arith.mulf %14, %93 : vector<8x128xf32>
    %95 = arith.addf %94, %17 : vector<8x128xf32>
    %c96_i32_32 = arith.constant 96 : i32
    %96 = tpu.dynamic_rotate %95 by %c96_i32_32 dim 1 : vector<8x128xf32>, i32 -> vector<8x128xf32>
    %c64_i32_33 = arith.constant 64 : i32
    %97 = tpu.dynamic_rotate %95 by %c64_i32_33 dim 1 : vector<8x128xf32>, i32 -> vector<8x128xf32>
    %c32_i32_34 = arith.constant 32 : i32
    %98 = tpu.dynamic_rotate %95 by %c32_i32_34 dim 1 : vector<8x128xf32>, i32 -> vector<8x128xf32>
    %99 = arith.mulf %96, %87 : vector<8x128xf32>
    %100 = arith.mulf %95, %97 : vector<8x128xf32>
    %101 = arith.addf %99, %100 : vector<8x128xf32>
    %102 = math.tanh %101 : vector<8x128xf32>
    %103 = arith.mulf %98, %102 : vector<8x128xf32>
    %104 = vector.extract_strided_slice %5 {offsets = [48, 0], sizes = [8, 128], strides = [1, 1]} : vector<64x128xf32> to vector<8x128xf32>
    %cst_35 = arith.constant dense<0.000000e+00> : vector<8x128xf32>
    %105 = tpu.matmul %103, %1, %cst_35 {dimension_numbers = #tpu.dot_dimension_numbers<[1], [0], [0], [1], [0, 0, 1, 1], [], []>} : vector<8x128xf32>, vector<128x128xf32>, vector<8x128xf32> -> vector<8x128xf32>
    %106 = arith.addf %104, %105 : vector<8x128xf32>
    %107 = math.tanh %106 : vector<8x128xf32>
    %108 = arith.mulf %14, %107 : vector<8x128xf32>
    %109 = arith.addf %108, %17 : vector<8x128xf32>
    %c96_i32_36 = arith.constant 96 : i32
    %110 = tpu.dynamic_rotate %109 by %c96_i32_36 dim 1 : vector<8x128xf32>, i32 -> vector<8x128xf32>
    %c64_i32_37 = arith.constant 64 : i32
    %111 = tpu.dynamic_rotate %109 by %c64_i32_37 dim 1 : vector<8x128xf32>, i32 -> vector<8x128xf32>
    %c32_i32_38 = arith.constant 32 : i32
    %112 = tpu.dynamic_rotate %109 by %c32_i32_38 dim 1 : vector<8x128xf32>, i32 -> vector<8x128xf32>
    %113 = arith.mulf %110, %101 : vector<8x128xf32>
    %114 = arith.mulf %109, %111 : vector<8x128xf32>
    %115 = arith.addf %113, %114 : vector<8x128xf32>
    %116 = math.tanh %115 : vector<8x128xf32>
    %117 = arith.mulf %112, %116 : vector<8x128xf32>
    %118 = vector.extract_strided_slice %5 {offsets = [56, 0], sizes = [8, 128], strides = [1, 1]} : vector<64x128xf32> to vector<8x128xf32>
    %cst_39 = arith.constant dense<0.000000e+00> : vector<8x128xf32>
    %119 = tpu.matmul %117, %1, %cst_39 {dimension_numbers = #tpu.dot_dimension_numbers<[1], [0], [0], [1], [0, 0, 1, 1], [], []>} : vector<8x128xf32>, vector<128x128xf32>, vector<8x128xf32> -> vector<8x128xf32>
    %120 = arith.addf %118, %119 : vector<8x128xf32>
    %121 = math.tanh %120 : vector<8x128xf32>
    %122 = arith.mulf %14, %121 : vector<8x128xf32>
    %123 = arith.addf %122, %17 : vector<8x128xf32>
    %c96_i32_40 = arith.constant 96 : i32
    %124 = tpu.dynamic_rotate %123 by %c96_i32_40 dim 1 : vector<8x128xf32>, i32 -> vector<8x128xf32>
    %c64_i32_41 = arith.constant 64 : i32
    %125 = tpu.dynamic_rotate %123 by %c64_i32_41 dim 1 : vector<8x128xf32>, i32 -> vector<8x128xf32>
    %c32_i32_42 = arith.constant 32 : i32
    %126 = tpu.dynamic_rotate %123 by %c32_i32_42 dim 1 : vector<8x128xf32>, i32 -> vector<8x128xf32>
    %127 = arith.mulf %124, %115 : vector<8x128xf32>
    %128 = arith.mulf %123, %125 : vector<8x128xf32>
    %129 = arith.addf %127, %128 : vector<8x128xf32>
    %130 = math.tanh %129 : vector<8x128xf32>
    %131 = arith.mulf %126, %130 : vector<8x128xf32>
    %cst_43 = arith.constant dense<0.000000e+00> : vector<8x128xf32>
    %132 = tpu.matmul %131, %2, %cst_43 {dimension_numbers = #tpu.dot_dimension_numbers<[1], [0], [0], [1], [0, 0, 1, 1], [], []>} : vector<8x128xf32>, vector<128x128xf32>, vector<8x128xf32> -> vector<8x128xf32>
    %133 = arith.addf %132, %3 : vector<8x128xf32>
    %cst_44 = arith.constant 0.000000e+00 : f32
    %134 = vector.broadcast %cst_44 : f32 to vector<8x128xf32>
    %135 = arith.maximumf %133, %134 : vector<8x128xf32>
    %c0_45 = arith.constant 0 : index
    %c0_46 = arith.constant 0 : index
    %136 = vector.load %arg2[%c0_45, %c0_46] : memref<8x128xf32, #tpu.memory_space<vmem>>, vector<8x128xf32>
    tpu.vector_store %arg2[%c0_45, %c0_46], %135 {strides = array<i32>} : memref<8x128xf32, #tpu.memory_space<vmem>>, vector<8x128xf32>,
    return
  }
}

</mosaic_0001>

<bundles_post_ra>
// kernel: tpu_custom_call.1
= control target key start
LH: loop header
LB: loop body
LE: loop exit
PB: predicated region body
PF: predicated region fallthrough
CT: control target
= control target key end

     0   :  { %7 = vsyncpa [#allocation3], 0  ;;  %s2093_s0 = inlined_call_operand.vmem [shape: f32[64,8], index: 0, kind: input, shape index: {}]   ;;  %s2094_s1 = inlined_call_operand.hbm [shape: f32[272,128], index: 1, kind: input, shape index: {}]   ;;  %s2095_s2 = inlined_call_operand.hbm [shape: f32[8,128], index: 2, kind: output, shape index: {}]  }
   0x1   :  { %8 = vsyncpa [#allocation4], 0  ;;  %s1778_s9 = smov [#allocation2]   ;;  %s1730_s13 = scalar_lea.hbm %s2094_s1, 4352 }
   0x2   :  { %s16_s10 = sshll.u32 %s1778_s9, 4  ;;  %p1731_p0 = scmp.ne.s32.totalorder %s2094_s1, %s1730_s13  ;;  %s17_s10 = int_to_ptr.vmem [resolvable:$true] %s16_s10 }
   0x3   :  { %p1734_p1 = scmp.lt.u32.totalorder %s1730_s13, %s2094_s1 }
   0x5   :  { %p1736_p2 = pnand %p1734_p1, %p1731_p0 }
   0x7   :  { %1739 = shalt.err (!%p1736_p2)
}
   0x8   :  { %s1740_s18 = scalar_lea.vmem %s17_s10, 4352  ;;  %p1745_p4 = scmp.lt.s32.totalorder %s17_s10, %s17_s10 }
   0x9   :  { %p1741_p3 = scmp.ne.s32.totalorder %s17_s10, %s1740_s18  ;;  %p1746_p5 = scmp.lt.s32.totalorder %s1740_s18, %s1740_s18 }
   0xb   :  { %p1747_p6 = por %p1746_p5, %p1745_p4 }
   0xd   :  { %p1748_p7 = pnand %p1747_p6, %p1741_p3 }
   0xf   :  { %1751 = shalt.err (!%p1748_p7)
}
  0x10   :  { %s1779_s19 = smov 128   ;;  %s1780_s20 = smov 8  }
  0x11   :  { %22 = dma.hbm_to_vmem [thread:$0]  %s2094_s1, 4352, %s17_s10, [#allocation3], %s1779_s19, %s1779_s19, %s1780_s20  }
  0x12   :  { %1774 = dma.done.wait [#allocation3], 4352  }
  0x13   :  { %1775 = vsyncadd [#allocation3], 4294962944  ;;  %v1781_v0 = vmov 0.0|0.0   ;;  %vm1782_vm0 = vmmov 0   ;;  %v1783_v1 = vmov 0.0   ;;  %v27_v2 = vld [vmem:[#allocation2 + $0x8] sm:$0xff]  ;;  %v198_v31 = vlaneseq }
  0x14   :  { %1471 = vmatprep.subr.bf16.mxu1 %v1781_v0  ;;  %1188 = vmatprep.mubr.msk.f32.mxu1 %vm1782_vm0, %v1783_v1  ;;  %v28_v3 = vld [vmem:[#allocation2 + $0x10] sm:$0xff]  ;;  %v29_v4 = vld [vmem:[#allocation2 + $0x18] sm:$0xff]  ;;  %v30_v6 = vld [vmem:[#allocation2 + $0x20] sm:$0xff]  ;;  %vm68_vm1 = vcmask 64512   ;;  %v1784_v36 = vmov 0.5   ;;  %s1785_s8 = smov 32  }
  0x15   :  { %v1819_v5 = vpack.c.bf16 %v28_v3, %v27_v2  ;;  %v1822_v7 = vpack.c.bf16 %v30_v6, %v29_v4  ;;  %v31_v8 = vld [vmem:[#allocation2 + $0x28] sm:$0xff]  ;;  %v32_v9 = vld [vmem:[#allocation2 + $0x30] sm:$0xff]  ;;  %v26_v10 = vld [vmem:[#allocation2] sm:$0xff]  ;;  %v199_v35 = vand.u32 127, %v198_v31  ;;  %s1786_s9 = smov 96   ;;  %s1787_s12 = smov 64  }
  0x16   :  { %1142 = vmatprep.subr.mxu0 %v26_v10  ;;  %v60_v11 = vld [vmem:[%s2093_s0] sm:$0xff]  ;;  %v61_v12 = vld [vmem:[%s2093_s0 + $0x8] sm:$0xff]  ;;  %v1833_v13 = vpack.c.bf16 %v32_v9, %v31_v8  ;;  %v33_v14 = vld [vmem:[#allocation2 + $0x38] sm:$0xff] }
  0x17   :  { %1473 = vmatpush3.bf16.msra.mxu1 %v1819_v5  ;;  %1143 = vmatpush3.msra.mxu0 %v26_v10  ;;  %v34_v15 = vld [vmem:[#allocation2 + $0x40] sm:$0xff]  ;;  %v35_v17 = vld [vmem:[#allocation2 + $0x48] sm:$0xff]  ;;  %v36_v18 = vld [vmem:[#allocation2 + $0x50] sm:$0xff]  ;;  %vm200_vm2 = vcmp.ge.s32.totalorder %v199_v35, 64  ;;  %vm201_vm3 = vcmp.lt.s32.totalorder %v199_v35, 96 }
  0x18   :  { %1474 = vmatprep.subr.bf16.mxu1 %v1781_v0  ;;  %1144 = vmatprep.mubr.msk.f32.mxu0 %vm68_vm1, %v60_v11  ;;  %v1841_v16 = vpack.c.bf16 %v34_v15, %v33_v14  ;;  %v1847_v19 = vpack.c.bf16 %v36_v18, %v35_v17  ;;  %v37_v20 = vld [vmem:[#allocation2 + $0x58] sm:$0xff]  ;;  %v38_v21 = vld [vmem:[#allocation2 + $0x60] sm:$0xff]  ;;  %v39_v23 = vld [vmem:[#allocation2 + $0x68] sm:$0xff] }
  0x19   :  { %1145 = vmatmul.mubr.msk.f32.vlgmr.msra.gmra.mrb[0].mxu0 %vm68_vm1, %v61_v12  ;;  %1495 = vmatprep.subr.bf16.mxu0 %v1781_v0  ;;  %v1853_v22 = vpack.c.bf16 %v38_v21, %v37_v20  ;;  %v40_v24 = vld [vmem:[#allocation2 + $0x70] sm:$0xff]  ;;  %v41_v26 = vld [vmem:[#allocation2 + $0x78] sm:$0xff]  ;;  %v42_v27 = vld [vmem:[#allocation2 + $0x80] sm:$0xff] }
  0x1a   :  { %1497 = vmatpush3.bf16.msra.mxu0 %v1819_v5  ;;  %v1859_v25 = vpack.c.bf16 %v40_v24, %v39_v23  ;;  %v1865_v28 = vpack.c.bf16 %v42_v27, %v41_v26  ;;  %vm202_vm4 = vmand %vm200_vm2, %vm201_vm3  ;;  %v62_v38 = vld [vmem:[%s2093_s0 + $0x10] sm:$0xff]  ;;  %v63_v39 = vld [vmem:[%s2093_s0 + $0x18] sm:$0xff] }
  0x1b   :  { %1476 = vmatpush3.bf16.msra.mxu1 %v1822_v7  ;;  %1498 = vmatprep.subr.bf16.mxu0 %v1781_v0  ;;  %v1897_v37 = vsel %vm202_vm4, 1.0, %v1784_v36  ;;  %v1906_v41 = vsel %vm202_vm4, 0.0, %v1784_v36  ;;  %v64_v42 = vld [vmem:[%s2093_s0 + $0x20] sm:$0xff]  ;;  %v65_v44 = vld [vmem:[%s2093_s0 + $0x28] sm:$0xff]  ;;  %v66_v46 = vld [vmem:[%s2093_s0 + $0x30] sm:$0xff] }
  0x1c   :  { %1477 = vmatprep.subr.bf16.mxu1 %v1781_v0  ;;  %1147 = vmatprep.mubr.msk.f32.mxu0 %vm68_vm1, %v62_v38  ;;  %v67_v47 = vld [vmem:[%s2093_s0 + $0x38] sm:$0xff]  ;;  %s1788_s0 = smov [#allocation5]  }
  0x1d   :  { %1148 = vmatmul.mubr.msk.f32.gmra.mrb[2].mxu0 %vm68_vm1, %v63_v39  ;;  %s963_s13 = sshll.u32 %s1788_s0, 4  ;;  %s964_s13 = int_to_ptr.vmem [resolvable:$true] %s963_s13 }
  0x1e   :  { %1500 = vmatpush3.bf16.msra.mxu0 %v1822_v7  ;;  %1150 = vmatprep.mubr.msk.f32.mxu0 %vm68_vm1, %v64_v42  ;;  %s1752_s14 = scalar_lea.vmem %s964_s13, 128  ;;  %p1757_p9 = scmp.lt.s32.totalorder %s964_s13, %s964_s13 }
  0x1f   :  { %1479 = vmatpush3.bf16.msra.mxu1 %v1833_v13  ;;  %1501 = vmatprep.subr.bf16.mxu0 %v1781_v0  ;;  %p1753_p8 = scmp.ne.s32.totalorder %s964_s13, %s1752_s14  ;;  %p1758_p10 = scmp.lt.s32.totalorder %s1752_s14, %s1752_s14 }
  0x20   :  { %1480 = vmatprep.subr.bf16.mxu1 %v1781_v0 }
  0x21   :  { %1151 = vmatmul.mubr.msk.f32.gmra.mrb[4].mxu0 %vm68_vm1, %v65_v44  ;;  %p1759_p11 = por %p1758_p10, %p1757_p9 }
  0x22   :  { %1503 = vmatpush3.bf16.msra.mxu0 %v1833_v13  ;;  %1153 = vmatprep.mubr.msk.f32.mxu0 %vm68_vm1, %v66_v46 }
  0x23   :  { %1482 = vmatpush3.bf16.msra.mxu1 %v1841_v16  ;;  %1504 = vmatprep.subr.bf16.mxu0 %v1781_v0  ;;  %p1760_p12 = pnand %p1759_p11, %p1753_p8 }
  0x24   :  { %1483 = vmatprep.subr.bf16.mxu1 %v1781_v0 }
  0x25   :  { %1154 = vmatmul.mubr.msk.f32.gmra.mrb[6].mxu0 %vm68_vm1, %v67_v47 }
  0x26   :  { %1506 = vmatpush3.bf16.msra.mxu0 %v1841_v16  ;;  %1223 = vmatprep.mubr.msk.f32.mxu0 %vm1782_vm0, %v1783_v1 }
  0x27   :  { %1485 = vmatpush3.bf16.msra.mxu1 %v1847_v19  ;;  %1507 = vmatprep.subr.bf16.mxu0 %v1781_v0 }
  0x28   :  { %1486 = vmatprep.subr.bf16.mxu1 %v1781_v0 }
  0x2a   :  { %1509 = vmatpush3.bf16.msra.mxu0 %v1847_v19 }
  0x2b   :  { %1488 = vmatpush3.bf16.msra.mxu1 %v1853_v22  ;;  %1510 = vmatprep.subr.bf16.mxu0 %v1781_v0 }
  0x2c   :  { %1489 = vmatprep.subr.bf16.mxu1 %v1781_v0 }
  0x2e   :  { %1512 = vmatpush3.bf16.msra.mxu0 %v1853_v22 }
  0x2f   :  { %1491 = vmatpush3.bf16.msra.mxu1 %v1859_v25  ;;  %1513 = vmatprep.subr.bf16.mxu0 %v1781_v0 }
  0x30   :  { %1492 = vmatprep.subr.bf16.mxu1 %v1781_v0 }
  0x32   :  { %1515 = vmatpush3.bf16.msra.mxu0 %v1859_v25 }
  0x33   :  { %1494 = vmatpush3.bf16.msra.mxu1 %v1865_v28  ;;  %1516 = vmatprep.subr.bf16.mxu0 %v1781_v0 }
  0x34   :  { %1519 = vmatprep.subr.bf16.mxu1 %v1781_v0 }
  0x36   :  { %1189 = vmatmul.mubr.f32.vlgmr.msra.gmra.mrb[0].mxu1 %v1783_v1  ;;  %1518 = vmatpush3.bf16.msra.mxu0 %v1865_v28 }
  0x37   :  { %1521 = vmatpush3.bf16.msra.mxu1 %v1819_v5  ;;  %1258 = vmatprep.mubr.msk.f32.mxu1 %vm1782_vm0, %v1783_v1 }
  0x38   :  { %1522 = vmatprep.subr.bf16.mxu1 %v1781_v0  ;;  %1543 = vmatprep.subr.bf16.mxu0 %v1781_v0 }
  0x3b   :  { %1524 = vmatpush3.bf16.msra.mxu1 %v1822_v7 }
  0x3c   :  { %1525 = vmatprep.subr.bf16.mxu1 %v1781_v0 }
  0x3f   :  { %1527 = vmatpush3.bf16.msra.mxu1 %v1833_v13 }
  0x40   :  { %1528 = vmatprep.subr.bf16.mxu1 %v1781_v0 }
  0x43   :  { %1530 = vmatpush3.bf16.msra.mxu1 %v1841_v16 }
  0x44   :  { %1531 = vmatprep.subr.bf16.mxu1 %v1781_v0 }
  0x47   :  { %1533 = vmatpush3.bf16.msra.mxu1 %v1847_v19 }
  0x48   :  { %1534 = vmatprep.subr.bf16.mxu1 %v1781_v0 }
  0x4b   :  { %1536 = vmatpush3.bf16.msra.mxu1 %v1853_v22 }
  0x4c   :  { %1537 = vmatprep.subr.bf16.mxu1 %v1781_v0 }
  0x4f   :  { %1539 = vmatpush3.bf16.msra.mxu1 %v1859_v25 }
  0x50   :  { %1540 = vmatprep.subr.bf16.mxu1 %v1781_v0 }
  0x53   :  { %1542 = vmatpush3.bf16.msra.mxu1 %v1865_v28 }
  0x54   :  { %1567 = vmatprep.subr.bf16.mxu1 %v1781_v0 }
  0xec   :  { %v1895_v29 = vpop.f32.mrb[0].mxu0 }
  0xed   :  { %v159_v30 = vpop.f32.mrb[1].mxu0 }
  0xf0   :  { %v1950_v56 = vpop.f32.mrb[2].mxu0 }
  0xf1   :  { %v169_v57 = vpop.f32.mrb[3].mxu0 }
  0xf4   :  { %v1952_v58 = vpop.f32.mrb[4].mxu0 }
  0xf5   :  { %v1954_v59 = vpop.f32.mrb[5].mxu0 }
  0xf8   :  { %v1956_v60 = vpop.f32.mrb[6].mxu0 }
  0xf9   :  { %v1958_v61 = vpop.f32.mrb[7].mxu0 }
 0x109   :  { %v271_v32 = vpop.f32.mrb[0].mxu1 }
 0x10a   :  { %v275_v33 = vadd.f32 %v271_v32, %v159_v30  ;;  %v1190_v34 = vpop.f32.mrb[1].mxu1 }
 0x10c   :  { %1698 = vtanh.f32 %v275_v33 }
 0x116   :  { %v1699_v40 = vpop.eup %1698 }
 0x117   :  { %v277_v43 = vmul.f32 %v1699_v40, %v1897_v37 }
 0x119   :  { %v278_v45 = vadd.f32 %v277_v43, %v1906_v41 }
 0x11b   :  { %283 = vrot.lane.b32.xlu1 %v278_v45, %s1785_s8  ;;  %279 = vrot.lane.b32.xlu0 %v278_v45, %s1786_s9 }
 0x11f   :  { %281 = vrot.lane.b32.xlu0 %v278_v45, %s1787_s12 }
 0x18d   :  { %v280_v48 = vpop.permute.xlu0 %279  ;;  %v284_v54 = vpop.permute.xlu1 %283 }
 0x18e   :  { %v285_v50 = vmul.f32 0.0, %v280_v48 }
 0x191   :  { %v282_v49 = vpop.permute.xlu0 %281 }
 0x192   :  { %v286_v51 = vmul.f32 %v282_v49, %v278_v45 }
 0x194   :  { %v287_v52 = vadd.f32 %v286_v51, %v285_v50 }
 0x196   :  { %1700 = vtanh.f32 %v287_v52 }
 0x1a0   :  { %v1701_v53 = vpop.eup %1700 }
 0x1a1   :  { %v289_v55 = vmul.f32 %v1701_v53, %v284_v54 }
 0x1a3   :  { %1224 = vmatmul.mubr.f32.vlgmr.msra.gmra.mrb[8].mxu0 %v289_v55 }
 0x1a4   :  { %1545 = vmatpush3.bf16.msra.mxu0 %v1819_v5  ;;  %1293 = vmatprep.mubr.msk.f32.mxu0 %vm1782_vm0, %v1783_v1 }
 0x1a5   :  { %1546 = vmatprep.subr.bf16.mxu0 %v1781_v0 }
 0x1a8   :  { %1548 = vmatpush3.bf16.msra.mxu0 %v1822_v7 }
 0x1a9   :  { %1549 = vmatprep.subr.bf16.mxu0 %v1781_v0 }
 0x1ac   :  { %1551 = vmatpush3.bf16.msra.mxu0 %v1833_v13 }
 0x1ad   :  { %1552 = vmatprep.subr.bf16.mxu0 %v1781_v0 }
 0x1b0   :  { %1554 = vmatpush3.bf16.msra.mxu0 %v1841_v16 }
 0x1b1   :  { %1555 = vmatprep.subr.bf16.mxu0 %v1781_v0 }
 0x1b4   :  { %1557 = vmatpush3.bf16.msra.mxu0 %v1847_v19 }
 0x1b5   :  { %1558 = vmatprep.subr.bf16.mxu0 %v1781_v0 }
 0x1b8   :  { %1560 = vmatpush3.bf16.msra.mxu0 %v1853_v22 }
 0x1b9   :  { %1561 = vmatprep.subr.bf16.mxu0 %v1781_v0 }
 0x1bc   :  { %1563 = vmatpush3.bf16.msra.mxu0 %v1859_v25 }
 0x1bd   :  { %1564 = vmatprep.subr.bf16.mxu0 %v1781_v0 }
 0x1c0   :  { %1566 = vmatpush3.bf16.msra.mxu0 %v1865_v28 }
 0x1c1   :  { %1591 = vmatprep.subr.bf16.mxu0 %v1781_v0 }
 0x276   :  { %v356_v62 = vpop.f32.mrb[8].mxu0 }
 0x277   :  { %v360_v63 = vadd.f32 %v1895_v29, %v356_v62  ;;  %v1225_v2 = vpop.f32.mrb[9].mxu0 }
 0x279   :  { %1702 = vtanh.f32 %v360_v63 }
 0x283   :  { %v1703_v3 = vpop.eup %1702 }
 0x284   :  { %v362_v4 = vmul.f32 %v1703_v3, %v1897_v37 }
 0x286   :  { %v363_v6 = vadd.f32 %v362_v4, %v1906_v41 }
 0x288   :  { %366 = vrot.lane.b32.xlu0 %v363_v6, %s1787_s12  ;;  %364 = vrot.lane.b32.xlu1 %v363_v6, %s1786_s9 }
 0x28c   :  { %368 = vrot.lane.b32.xlu1 %v363_v6, %s1785_s8 }
 0x2fa   :  { %v367_v8 = vpop.permute.xlu0 %366  ;;  %v365_v9 = vpop.permute.xlu1 %364 }
 0x2fb   :  { %v371_v10 = vmul.f32 %v367_v8, %v363_v6  ;;  %v370_v11 = vmul.f32 %v365_v9, %v287_v52 }
 0x2fd   :  { %v372_v12 = vadd.f32 %v371_v10, %v370_v11 }
 0x2fe   :  { %v369_v15 = vpop.permute.xlu1 %368 }
 0x2ff   :  { %1704 = vtanh.f32 %v372_v12 }
 0x309   :  { %v1705_v14 = vpop.eup %1704 }
 0x30a   :  { %v374_v17 = vmul.f32 %v1705_v14, %v369_v15 }
 0x30c   :  { %1259 = vmatmul.mubr.f32.vlgmr.msra.gmra.mrb[2].mxu1 %v374_v17 }
 0x30d   :  { %1569 = vmatpush3.bf16.msra.mxu1 %v1819_v5  ;;  %1328 = vmatprep.mubr.msk.f32.mxu1 %vm1782_vm0, %v1783_v1 }
 0x30e   :  { %1570 = vmatprep.subr.bf16.mxu1 %v1781_v0 }
 0x311   :  { %1572 = vmatpush3.bf16.msra.mxu1 %v1822_v7 }
 0x312   :  { %1573 = vmatprep.subr.bf16.mxu1 %v1781_v0 }
 0x315   :  { %1575 = vmatpush3.bf16.msra.mxu1 %v1833_v13 }
 0x316   :  { %1576 = vmatprep.subr.bf16.mxu1 %v1781_v0 }
 0x319   :  { %1578 = vmatpush3.bf16.msra.mxu1 %v1841_v16 }
 0x31a   :  { %1579 = vmatprep.subr.bf16.mxu1 %v1781_v0 }
 0x31d   :  { %1581 = vmatpush3.bf16.msra.mxu1 %v1847_v19 }
 0x31e   :  { %1582 = vmatprep.subr.bf16.mxu1 %v1781_v0 }
 0x321   :  { %1584 = vmatpush3.bf16.msra.mxu1 %v1853_v22 }
 0x322   :  { %1585 = vmatprep.subr.bf16.mxu1 %v1781_v0 }
 0x325   :  { %1587 = vmatpush3.bf16.msra.mxu1 %v1859_v25 }
 0x326   :  { %1588 = vmatprep.subr.bf16.mxu1 %v1781_v0 }
 0x329   :  { %1590 = vmatpush3.bf16.msra.mxu1 %v1865_v28 }
 0x32a   :  { %1615 = vmatprep.subr.bf16.mxu1 %v1781_v0 }
 0x3df   :  { %v441_v18 = vpop.f32.mrb[2].mxu1 }
 0x3e0   :  { %v445_v20 = vadd.f32 %v441_v18, %v169_v57  ;;  %v1260_v21 = vpop.f32.mrb[3].mxu1 }
 0x3e2   :  { %1706 = vtanh.f32 %v445_v20 }
 0x3ec   :  { %v1707_v23 = vpop.eup %1706 }
 0x3ed   :  { %v447_v24 = vmul.f32 %v1707_v23, %v1897_v37 }
 0x3ef   :  { %v448_v26 = vadd.f32 %v447_v24, %v1906_v41 }
 0x3f1   :  { %451 = vrot.lane.b32.xlu1 %v448_v26, %s1787_s12  ;;  %449 = vrot.lane.b32.xlu0 %v448_v26, %s1786_s9 }
 0x3f5   :  { %453 = vrot.lane.b32.xlu0 %v448_v26, %s1785_s8 }
 0x463   :  { %v452_v27 = vpop.permute.xlu1 %451  ;;  %v450_v29 = vpop.permute.xlu0 %449 }
 0x464   :  { %v456_v30 = vmul.f32 %v452_v27, %v448_v26  ;;  %v455_v31 = vmul.f32 %v450_v29, %v372_v12 }
 0x466   :  { %v457_v32 = vadd.f32 %v456_v30, %v455_v31 }
 0x467   :  { %v454_v34 = vpop.permute.xlu0 %453 }
 0x468   :  { %1708 = vtanh.f32 %v457_v32 }
 0x472   :  { %v1709_v33 = vpop.eup %1708 }
 0x473   :  { %v459_v35 = vmul.f32 %v1709_v33, %v454_v34  ;;  %v44_v33 = vld [vmem:[#allocation2 + $0x90] sm:$0xff]  ;;  %v45_v34 = vld [vmem:[#allocation2 + $0x98] sm:$0xff] }
 0x475   :  { %1294 = vmatmul.mubr.f32.vlgmr.msra.gmra.mrb[10].mxu0 %v459_v35 }
 0x476   :  { %1593 = vmatpush3.bf16.msra.mxu0 %v1819_v5  ;;  %1363 = vmatprep.mubr.msk.f32.mxu0 %vm1782_vm0, %v1783_v1 }
 0x477   :  { %1594 = vmatprep.subr.bf16.mxu0 %v1781_v0 }
 0x47a   :  { %1596 = vmatpush3.bf16.msra.mxu0 %v1822_v7 }
 0x47b   :  { %1597 = vmatprep.subr.bf16.mxu0 %v1781_v0 }
 0x47e   :  { %1599 = vmatpush3.bf16.msra.mxu0 %v1833_v13 }
 0x47f   :  { %1600 = vmatprep.subr.bf16.mxu0 %v1781_v0 }
 0x482   :  { %1602 = vmatpush3.bf16.msra.mxu0 %v1841_v16 }
 0x483   :  { %1603 = vmatprep.subr.bf16.mxu0 %v1781_v0 }
 0x486   :  { %1605 = vmatpush3.bf16.msra.mxu0 %v1847_v19 }
 0x487   :  { %1606 = vmatprep.subr.bf16.mxu0 %v1781_v0 }
 0x48a   :  { %1608 = vmatpush3.bf16.msra.mxu0 %v1853_v22 }
 0x48b   :  { %1609 = vmatprep.subr.bf16.mxu0 %v1781_v0 }
 0x48e   :  { %1611 = vmatpush3.bf16.msra.mxu0 %v1859_v25 }
 0x48f   :  { %1612 = vmatprep.subr.bf16.mxu0 %v1781_v0 }
 0x492   :  { %1614 = vmatpush3.bf16.msra.mxu0 %v1865_v28 }
 0x493   :  { %1639 = vmatprep.subr.bf16.mxu0 %v1781_v0 }
 0x548   :  { %v526_v36 = vpop.f32.mrb[10].mxu0 }
 0x549   :  { %v530_v38 = vadd.f32 %v1950_v56, %v526_v36  ;;  %v1295_v39 = vpop.f32.mrb[11].mxu0  ;;  %v46_v36 = vld [vmem:[#allocation2 + $0xa0] sm:$0xff] }
 0x54a   :  { %v47_v39 = vld [vmem:[#allocation2 + $0xa8] sm:$0xff] }
 0x54b   :  { %1710 = vtanh.f32 %v530_v38  ;;  %v1667_v38 = vpack.c.bf16 %v46_v36, %v45_v34 }
 0x555   :  { %v1711_v40 = vpop.eup %1710 }
 0x556   :  { %v532_v42 = vmul.f32 %v1711_v40, %v1897_v37  ;;  %v48_v40 = vld [vmem:[#allocation2 + $0xb0] sm:$0xff] }
 0x558   :  { %v533_v43 = vadd.f32 %v532_v42, %v1906_v41  ;;  %v1670_v42 = vpack.c.bf16 %v48_v40, %v47_v39 }
 0x55a   :  { %536 = vrot.lane.b32.xlu0 %v533_v43, %s1787_s12  ;;  %534 = vrot.lane.b32.xlu1 %v533_v43, %s1786_s9 }
 0x55e   :  { %538 = vrot.lane.b32.xlu1 %v533_v43, %s1785_s8 }
 0x5cc   :  { %v537_v44 = vpop.permute.xlu0 %536  ;;  %v535_v45 = vpop.permute.xlu1 %534 }
 0x5cd   :  { %v541_v46 = vmul.f32 %v537_v44, %v533_v43  ;;  %v540_v47 = vmul.f32 %v535_v45, %v457_v32  ;;  %v43_v32 = vld [vmem:[#allocation2 + $0x88] sm:$0xff]  ;;  %v49_v43 = vld [vmem:[#allocation2 + $0xb8] sm:$0xff]  ;;  %v50_v44 = vld [vmem:[#allocation2 + $0xc0] sm:$0xff] }
 0x5ce   :  { %v1664_v35 = vpack.c.bf16 %v44_v33, %v43_v32  ;;  %v1673_v45 = vpack.c.bf16 %v50_v44, %v49_v43 }
 0x5cf   :  { %v542_v48 = vadd.f32 %v541_v46, %v540_v47 }
 0x5d0   :  { %v539_v50 = vpop.permute.xlu1 %538 }
 0x5d1   :  { %1712 = vtanh.f32 %v542_v48 }
 0x5db   :  { %v1713_v49 = vpop.eup %1712 }
 0x5dc   :  { %v544_v51 = vmul.f32 %v1713_v49, %v539_v50  ;;  %v51_v49 = vld [vmem:[#allocation2 + $0xc8] sm:$0xff]  ;;  %v52_v50 = vld [vmem:[#allocation2 + $0xd0] sm:$0xff] }
 0x5de   :  { %1329 = vmatmul.mubr.f32.vlgmr.msra.gmra.mrb[4].mxu1 %v544_v51  ;;  %v1676_v51 = vpack.c.bf16 %v52_v50, %v51_v49 }
 0x5df   :  { %1617 = vmatpush3.bf16.msra.mxu1 %v1819_v5  ;;  %1398 = vmatprep.mubr.msk.f32.mxu1 %vm1782_vm0, %v1783_v1 }
 0x5e0   :  { %1618 = vmatprep.subr.bf16.mxu1 %v1781_v0 }
 0x5e3   :  { %1620 = vmatpush3.bf16.msra.mxu1 %v1822_v7 }
 0x5e4   :  { %1621 = vmatprep.subr.bf16.mxu1 %v1781_v0 }
 0x5e7   :  { %1623 = vmatpush3.bf16.msra.mxu1 %v1833_v13 }
 0x5e8   :  { %1624 = vmatprep.subr.bf16.mxu1 %v1781_v0 }
 0x5eb   :  { %1626 = vmatpush3.bf16.msra.mxu1 %v1841_v16 }
 0x5ec   :  { %1627 = vmatprep.subr.bf16.mxu1 %v1781_v0 }
 0x5ef   :  { %1629 = vmatpush3.bf16.msra.mxu1 %v1847_v19 }
 0x5f0   :  { %1630 = vmatprep.subr.bf16.mxu1 %v1781_v0 }
 0x5f3   :  { %1632 = vmatpush3.bf16.msra.mxu1 %v1853_v22 }
 0x5f4   :  { %1633 = vmatprep.subr.bf16.mxu1 %v1781_v0 }
 0x5f7   :  { %1635 = vmatpush3.bf16.msra.mxu1 %v1859_v25 }
 0x5f8   :  { %1636 = vmatprep.subr.bf16.mxu1 %v1781_v0 }
 0x5fb   :  { %1638 = vmatpush3.bf16.msra.mxu1 %v1865_v28 }
 0x5fc   :  { %1663 = vmatprep.subr.bf16.mxu1 %v1781_v0 }
 0x6b1   :  { %v611_v52 = vpop.f32.mrb[4].mxu1 }
 0x6b2   :  { %v615_v53 = vadd.f32 %v611_v52, %v1954_v59  ;;  %v1330_v54 = vpop.f32.mrb[5].mxu1  ;;  %v53_v52 = vld [vmem:[#allocation2 + $0xd8] sm:$0xff] }
 0x6b4   :  { %1714 = vtanh.f32 %v615_v53  ;;  %v54_v53 = vld [vmem:[#allocation2 + $0xe0] sm:$0xff] }
 0x6b5   :  { %v1679_v54 = vpack.c.bf16 %v54_v53, %v53_v52 }
 0x6be   :  { %v1715_v55 = vpop.eup %1714 }
 0x6bf   :  { %v617_v56 = vmul.f32 %v1715_v55, %v1897_v37  ;;  %v55_v55 = vld [vmem:[#allocation2 + $0xe8] sm:$0xff] }
 0x6c1   :  { %v618_v57 = vadd.f32 %v617_v56, %v1906_v41  ;;  %v56_v56 = vld [vmem:[#allocation2 + $0xf0] sm:$0xff] }
 0x6c3   :  { %621 = vrot.lane.b32.xlu1 %v618_v57, %s1787_s12  ;;  %619 = vrot.lane.b32.xlu0 %v618_v57, %s1786_s9 }
 0x6c7   :  { %623 = vrot.lane.b32.xlu0 %v618_v57, %s1785_s8 }
 0x735   :  { %v622_v62 = vpop.permute.xlu1 %621  ;;  %v620_v63 = vpop.permute.xlu0 %619 }
 0x736   :  { %v626_v2 = vmul.f32 %v622_v62, %v618_v57  ;;  %v625_v3 = vmul.f32 %v620_v63, %v542_v48  ;;  %v1682_v62 = vpack.c.bf16 %v56_v56, %v55_v55 }
 0x738   :  { %v627_v4 = vadd.f32 %v626_v2, %v625_v3  ;;  %v57_v2 = vld [vmem:[#allocation2 + $0xf8] sm:$0xff]  ;;  %v58_v3 = vld [vmem:[#allocation2 + $0x100] sm:$0xff] }
 0x739   :  { %v624_v6 = vpop.permute.xlu0 %623 }
 0x73a   :  { %1716 = vtanh.f32 %v627_v4 }
 0x744   :  { %v1717_v59 = vpop.eup %1716 }
 0x745   :  { %v629_v8 = vmul.f32 %v1717_v59, %v624_v6 }
 0x747   :  { %1364 = vmatmul.mubr.f32.vlgmr.msra.gmra.mrb[12].mxu0 %v629_v8 }
 0x748   :  { %1641 = vmatpush3.bf16.msra.mxu0 %v1819_v5  ;;  %1433 = vmatprep.mubr.msk.f32.mxu0 %vm1782_vm0, %v1783_v1 }
 0x749   :  { %1642 = vmatprep.subr.bf16.mxu0 %v1781_v0 }
 0x74c   :  { %1644 = vmatpush3.bf16.msra.mxu0 %v1822_v7 }
 0x74d   :  { %1645 = vmatprep.subr.bf16.mxu0 %v1781_v0 }
 0x750   :  { %1647 = vmatpush3.bf16.msra.mxu0 %v1833_v13 }
 0x751   :  { %1648 = vmatprep.subr.bf16.mxu0 %v1781_v0 }
 0x754   :  { %1650 = vmatpush3.bf16.msra.mxu0 %v1841_v16 }
 0x755   :  { %1651 = vmatprep.subr.bf16.mxu0 %v1781_v0 }
 0x758   :  { %1653 = vmatpush3.bf16.msra.mxu0 %v1847_v19 }
 0x759   :  { %1654 = vmatprep.subr.bf16.mxu0 %v1781_v0 }
 0x75c   :  { %1656 = vmatpush3.bf16.msra.mxu0 %v1853_v22 }
 0x75d   :  { %1657 = vmatprep.subr.bf16.mxu0 %v1781_v0 }
 0x760   :  { %1659 = vmatpush3.bf16.msra.mxu0 %v1859_v25 }
 0x761   :  { %1660 = vmatprep.subr.bf16.mxu0 %v1781_v0 }
 0x764   :  { %1662 = vmatpush3.bf16.msra.mxu0 %v1865_v28 }
 0x81a   :  { %v696_v5 = vpop.f32.mrb[12].mxu0 }
 0x81b   :  { %v700_v7 = vadd.f32 %v1952_v58, %v696_v5  ;;  %v1365_v13 = vpop.f32.mrb[13].mxu0 }
 0x81d   :  { %1718 = vtanh.f32 %v700_v7 }
 0x827   :  { %v1719_v16 = vpop.eup %1718 }
 0x828   :  { %v702_v19 = vmul.f32 %v1719_v16, %v1897_v37 }
 0x82a   :  { %v703_v9 = vadd.f32 %v702_v19, %v1906_v41 }
 0x82c   :  { %706 = vrot.lane.b32.xlu0 %v703_v9, %s1787_s12  ;;  %704 = vrot.lane.b32.xlu1 %v703_v9, %s1786_s9 }
 0x830   :  { %708 = vrot.lane.b32.xlu1 %v703_v9, %s1785_s8 }
 0x89e   :  { %v707_v22 = vpop.permute.xlu0 %706  ;;  %v705_v25 = vpop.permute.xlu1 %704 }
 0x89f   :  { %v711_v10 = vmul.f32 %v707_v22, %v703_v9  ;;  %v710_v28 = vmul.f32 %v705_v25, %v627_v4  ;;  %v1685_v4 = vpack.c.bf16 %v58_v3, %v57_v2 }
 0x8a1   :  { %v712_v11 = vadd.f32 %v711_v10, %v710_v28 }
 0x8a2   :  { %v709_v12 = vpop.permute.xlu1 %708 }
 0x8a3   :  { %1720 = vtanh.f32 %v712_v11 }
 0x8ad   :  { %v1721_v58 = vpop.eup %1720 }
 0x8ae   :  { %v714_v14 = vmul.f32 %v1721_v58, %v709_v12 }
 0x8b0   :  { %1399 = vmatmul.mubr.f32.vlgmr.msra.gmra.mrb[6].mxu1 %v714_v14 }
 0x8b1   :  { %1468 = vmatprep.mubr.msk.f32.mxu1 %vm1782_vm0, %v1783_v1  ;;  %1665 = vmatpush3.bf16.msra.mxu1 %v1664_v35 }
 0x8b2   :  { %1666 = vmatprep.subr.bf16.mxu1 %v1781_v0 }
 0x8b5   :  { %1668 = vmatpush3.bf16.msra.mxu1 %v1667_v38 }
 0x8b6   :  { %1669 = vmatprep.subr.bf16.mxu1 %v1781_v0 }
 0x8b9   :  { %1671 = vmatpush3.bf16.msra.mxu1 %v1670_v42 }
 0x8ba   :  { %1672 = vmatprep.subr.bf16.mxu1 %v1781_v0 }
 0x8bd   :  { %1674 = vmatpush3.bf16.msra.mxu1 %v1673_v45 }
 0x8be   :  { %1675 = vmatprep.subr.bf16.mxu1 %v1781_v0 }
 0x8c1   :  { %1677 = vmatpush3.bf16.msra.mxu1 %v1676_v51 }
 0x8c2   :  { %1678 = vmatprep.subr.bf16.mxu1 %v1781_v0 }
 0x8c5   :  { %1680 = vmatpush3.bf16.msra.mxu1 %v1679_v54 }
 0x8c6   :  { %1681 = vmatprep.subr.bf16.mxu1 %v1781_v0 }
 0x8c9   :  { %1683 = vmatpush3.bf16.msra.mxu1 %v1682_v62 }
 0x8ca   :  { %1684 = vmatprep.subr.bf16.mxu1 %v1781_v0  ;;  %v59_v0 = vld [vmem:[#allocation2 + $0x108] sm:$0xff] }
 0x8cd   :  { %1686 = vmatpush3.bf16.msra.mxu1 %v1685_v4 }
 0x983   :  { %v781_v15 = vpop.f32.mrb[6].mxu1 }
 0x984   :  { %v785_v17 = vadd.f32 %v781_v15, %v1958_v61  ;;  %v1400_v18 = vpop.f32.mrb[7].mxu1 }
 0x986   :  { %1722 = vtanh.f32 %v785_v17 }
 0x990   :  { %v1723_v20 = vpop.eup %1722 }
 0x991   :  { %v787_v21 = vmul.f32 %v1723_v20, %v1897_v37 }
 0x993   :  { %v788_v23 = vadd.f32 %v787_v21, %v1906_v41 }
 0x995   :  { %791 = vrot.lane.b32.xlu1 %v788_v23, %s1787_s12  ;;  %789 = vrot.lane.b32.xlu0 %v788_v23, %s1786_s9 }
 0x999   :  { %793 = vrot.lane.b32.xlu0 %v788_v23, %s1785_s8 }
 0xa07   :  { %v792_v24 = vpop.permute.xlu1 %791  ;;  %v790_v26 = vpop.permute.xlu0 %789 }
 0xa08   :  { %v796_v27 = vmul.f32 %v792_v24, %v788_v23  ;;  %v795_v1 = vmul.f32 %v790_v26, %v712_v11 }
 0xa0a   :  { %v797_v29 = vadd.f32 %v796_v27, %v795_v1 }
 0xa0b   :  { %v794_v30 = vpop.permute.xlu0 %793 }
 0xa0c   :  { %1724 = vtanh.f32 %v797_v29 }
 0xa16   :  { %v1725_v61 = vpop.eup %1724 }
 0xa17   :  { %v799_v31 = vmul.f32 %v1725_v61, %v794_v30 }
 0xa19   :  { %1434 = vmatmul.mubr.f32.vlgmr.msra.gmra.mrb[14].mxu0 %v799_v31 }
 0xaec   :  { %v866_v46 = vpop.f32.mrb[14].mxu0 }
 0xaed   :  { %v870_v47 = vadd.f32 %v1956_v60, %v866_v46  ;;  %v1435_v48 = vpop.f32.mrb[15].mxu0 }
 0xaef   :  { %1726 = vtanh.f32 %v870_v47 }
 0xaf9   :  { %v1727_v57 = vpop.eup %1726 }
 0xafa   :  { %v872_v60 = vmul.f32 %v1727_v57, %v1897_v37 }
 0xafc   :  { %v873_v63 = vadd.f32 %v872_v60, %v1906_v41 }
 0xafe   :  { %876 = vrot.lane.b32.xlu0 %v873_v63, %s1787_s12  ;;  %874 = vrot.lane.b32.xlu1 %v873_v63, %s1786_s9 }
 0xb02   :  { %878 = vrot.lane.b32.xlu1 %v873_v63, %s1785_s8 }
 0xb70   :  { %v877_v59 = vpop.permute.xlu0 %876  ;;  %v875_v6 = vpop.permute.xlu1 %874 }
 0xb71   :  { %v881_v8 = vmul.f32 %v877_v59, %v873_v63  ;;  %v880_v5 = vmul.f32 %v875_v6, %v797_v29 }
 0xb73   :  { %v882_v37 = vadd.f32 %v881_v8, %v880_v5 }
 0xb74   :  { %v879_v41 = vpop.permute.xlu1 %878 }
 0xb75   :  { %1728 = vtanh.f32 %v882_v37 }
 0xb7f   :  { %v1729_v7 = vpop.eup %1728 }
 0xb80   :  { %v884_v13 = vmul.f32 %v1729_v7, %v879_v41 }
 0xb82   :  { %1469 = vmatmul.mubr.f32.vlgmr.msra.gmra.mrb[8].mxu1 %v884_v13 }
 0xc55   :  { %v951_v16 = vpop.f32.mrb[8].mxu1 }
 0xc56   :  { %v952_v19 = vadd.f32 %v951_v16, %v59_v0  ;;  %v1470_v9 = vpop.f32.mrb[9].mxu1 }
 0xc58   :  { %v955_v22 = vmax.f32 %v952_v19, 0.0 }
 0xc5a   :  { %956 = vst [vmem:[#allocation5] sm:$0xff] %v955_v22 }
 0xc5b   :  { %1763 = shalt.err (!%p1760_p12)
}
 0xc5c   :  { %s1764_s17 = scalar_lea.hbm %s2095_s2, 128 }
 0xc5d   :  { %p1765_p13 = scmp.ne.s32.totalorder %s2095_s2, %s1764_s17  ;;  %p1768_p0 = scmp.lt.u32.totalorder %s1764_s17, %s2095_s2 }
 0xc5f   :  { %p1770_p1 = pnand %p1768_p0, %p1765_p13 }
 0xc61   :  { %1773 = shalt.err (!%p1770_p1)
}
 0xc62   :  { %966 = dma.vmem_to_hbm [thread:$0]  %s964_s13, 128, %s2095_s2, [#allocation4]  }
 0xc63   :  { %1776 = dma.done.wait [#allocation4], 128  }
 0xc64   :  { %1777 = vsyncadd [#allocation4], 4294967168 }
 0xc65   :  { %970 = vsyncpa [#allocation3], 1 }
 0xc66   :  { %971 = vsyncpa [#allocation4], 1 }

</bundles_post_ra>
